<compile_context>
chip_gen: v7x
topology: tpu7x:2x2x1
jax: 0.10.0
libtpu: 0.0.40
codegen_flags: <defaults>
</compile_context>

<pallas_src>
import functools

import jax
import jax.numpy as jnp
from jax.experimental import pallas as pl
from jax.experimental.pallas import tpu as pltpu


# ------------------------------------------------------------------ helpers --
def _round_up(x: int, m: int) -> int:
    return ((x + m - 1) // m) * m


def _pick_tb(B: int) -> int:
    """Batch-tile choice: fill the MXU M dimension, keep tiles VMEM-cheap, and
    give v7x's two TensorCores >=2 parallel grid steps at large batch."""
    if B <= 256:
        return max(8, _round_up(B, 8))   # single step, whole batch in one tile
    return 256                            # >=2 parallel steps, 256-row MXU fill


# ------------------------------------------------------------------ kernel ---
def _mlp_kernel(z_ref, w1_ref, b1_ref, w2_ref, b2_ref, w3_ref, b3_ref, o_ref):
    # z_ref: (TB, d_z) f32 tile.  Weights are bf16; biases f32.  All matmuls
    # accumulate in f32 on the MXU; tanh stays f32 (v5e-safe).
    z = z_ref[...].astype(jnp.bfloat16)
    h1 = jnp.tanh(
        jnp.dot(z, w1_ref[...], preferred_element_type=jnp.float32) + b1_ref[...]
    )
    h2 = jnp.tanh(
        jnp.dot(h1.astype(jnp.bfloat16), w2_ref[...],
                preferred_element_type=jnp.float32) + b2_ref[...]
    )
    o_ref[...] = (
        jnp.dot(h2.astype(jnp.bfloat16), w3_ref[...],
                preferred_element_type=jnp.float32) + b3_ref[...]
    ).astype(o_ref.dtype)


# ---------------------------------------------------------- param handling ---
def init_params(key, input_dim, augment_dim, hidden_dim):
    """Deterministic PyTorch-Linear-style init (uniform +/- 1/sqrt(fan_in)).
    Weights stored as (in_features, out_features) so the kernel computes x@W+b."""
    d_in = input_dim + augment_dim + 1
    h = hidden_dim
    ks = jax.random.split(key, 6)

    def lin(kw, kb, fan_in, fan_out):
        bound = 1.0 / jnp.sqrt(jnp.float32(fan_in))
        w = jax.random.uniform(kw, (fan_in, fan_out), jnp.float32, -bound, bound)
        b = jax.random.uniform(kb, (1, fan_out), jnp.float32, -bound, bound)
        return w, b

    w1, b1 = lin(ks[0], ks[1], d_in, h)
    w2, b2 = lin(ks[2], ks[3], h, h)
    w3, b3 = lin(ks[4], ks[5], h, d_in)
    return {"w1": w1, "b1": b1, "w2": w2, "b2": b2, "w3": w3, "b3": b3}


def prepare_params(params):
    """One-time preprocessing (run ONCE per model, not per ODE step):
       * split the time row out of W1 (so concat([t, z]) is never materialized),
       * cast matmul weights to bf16 (f32 accumulation happens on the MXU),
       * pad W3/b3 output columns to a multiple of 128 (lane-dense output)."""
    w1, b1 = params["w1"], params["b1"]          # (d_in, H), (1, H)
    w2, b2 = params["w2"], params["b2"]          # (H, H),   (1, H)
    w3, b3 = params["w3"], params["b3"]          # (H, d_out), (1, d_out)

    d_out = w3.shape[1]
    d_out_pad = _round_up(d_out, 128)
    pad = d_out_pad - d_out
    if pad:
        w3 = jnp.pad(w3, ((0, 0), (0, pad)))
        b3 = jnp.pad(b3, ((0, 0), (0, pad)))

    return {
        "w1_t": w1[0:1, :],                          # (1, H)  f32  time row
        "w1_z": w1[1:, :].astype(jnp.bfloat16),      # (d_z, H) bf16
        "b1": b1,                                    # (1, H)  f32
        "w2": w2.astype(jnp.bfloat16),               # (H, H)  bf16
        "b2": b2,                                    # (1, H)  f32
        "w3": w3.astype(jnp.bfloat16),               # (H, d_out_pad) bf16
        "b3": b3,                                    # (1, d_out_pad) f32
    }


# ----------------------------------------------------------------- forward ---
@jax.jit
def augmented_ode_func_forward(t, z, prep):
    """Pallas forward pass of AugmentedODEFunc.

    t: scalar float32
    z: (B, input_dim + augment_dim) float32
    prep: output of prepare_params(...)
    """
    w1_t, w1_z, b1 = prep["w1_t"], prep["w1_z"], prep["b1"]
    w2, b2 = prep["w2"], prep["b2"]
    w3, b3 = prep["w3"], prep["b3"]

    B, d_z = z.shape                    # d_z = input_dim + augment_dim
    H = w1_z.shape[1]
    d_out_pad = w3.shape[1]
    output_dim = d_z

    # Fold the time column into the first-layer bias:
    #   concat([t, z], 1) @ W1 + b1  ==  z @ W1[1:] + (b1 + t * W1[0:1])
    # (a single (1, H) f32 op -- replaces the per-call broadcast + concat).
    b1_eff = b1 + t * w1_t

    tb = _pick_tb(B)
    pad = (-B) % tb
    x = z if pad == 0 else jnp.pad(z, ((0, pad), (0, 0)))
    bp = x.shape[0]
    grid = (bp // tb,)

    full = lambda i: (0, 0)             # resident operands: same block each step

    cost = pl.CostEstimate(
        flops=2 * bp * (d_z * H + H * H + H * d_out_pad),
        transcendentals=2 * bp * H,
        bytes_accessed=(
            bp * d_z * 4                       # activations in
            + bp * d_out_pad * 4               # output
            + (d_z * H + H * H + H * d_out_pad) * 2   # bf16 weights
            + (2 * H + d_out_pad) * 4          # f32 biases
        ),
    )

    out = pl.pallas_call(
        _mlp_kernel,
        out_shape=jax.ShapeDtypeStruct((bp, d_out_pad), jnp.float32),
        grid_spec=pltpu.PrefetchScalarGridSpec(
            num_scalar_prefetch=0,
            grid=grid,
            in_specs=[
                pl.BlockSpec((tb, d_z), lambda i: (i, 0)),      # z tile
                pl.BlockSpec((d_z, H), full),                   # w1 (no time row)
                pl.BlockSpec((1, H), full),                     # b1_eff
                pl.BlockSpec((H, H), full),                     # w2
                pl.BlockSpec((1, H), full),                     # b2
                pl.BlockSpec((H, d_out_pad), full),             # w3 (padded cols)
                pl.BlockSpec((1, d_out_pad), full),             # b3
            ],
            out_specs=pl.BlockSpec((tb, d_out_pad), lambda i: (i, 0)),
        ),
        compiler_params=pltpu.CompilerParams(
            dimension_semantics=("parallel",),
        ),
        cost_estimate=cost,
    )(x, w1_z, b1_eff, w2, b2, w3, b3)

    # Drop batch padding and slice to output_dim (== out[:, :input_dim+augment_dim]).
    return out[:B, :output_dim]


# -------------------------------------------------------------------- main ---
if __name__ == "__main__":
    # Small, module-consistent shapes:
    #   input_dim = 117, augment_dim = 10  ->  z feature dim = 127,
    #   concatenated dim = 128; hidden_dim = 256; num_layers = 2; batch = 8.
    input_dim = 117
    augment_dim = 10
    hidden_dim = 256
    batch = 8

    key = jax.random.PRNGKey(0)
    k_params, k_z = jax.random.split(key)

    params = init_params(k_params, input_dim, augment_dim, hidden_dim)
    prep = prepare_params(params)

    z = jax.random.normal(k_z, (batch, input_dim + augment_dim), jnp.float32)
    t = jnp.float32(0.25)

    out = augmented_ode_func_forward(t, z, prep)
    out = jax.block_until_ready(out)

    # Pure-JAX f32 reference of the same math (PyTorch semantics).  The kernel
    # uses bf16 matmul operands with f32 accumulation, so tolerance is relaxed.
    t_vec = jnp.ones((batch, 1), jnp.float32) * t
    x_ref = jnp.concatenate([t_vec, z], axis=1)
    h1 = jnp.tanh(x_ref @ params["w1"] + params["b1"])
    h2 = jnp.tanh(h1 @ params["w2"] + params["b2"])
    ref = (h2 @ params["w3"] + params["b3"])[:, : input_dim + augment_dim]

    assert out.shape == (batch, input_dim + augment_dim)
    assert bool(jnp.allclose(out, ref, atol=3e-2, rtol=3e-2)), (
        float(jnp.max(jnp.abs(out - ref)))
    )

    print("KERNEL_OK")
</pallas_src>

<mosaic_0001>
module attributes {stable_mosaic.version = 11 : i64} {
  func.func @_mlp_kernel(%arg0: i32, %arg1: memref<8x127xf32, #tpu.memory_space<vmem>>, %arg2: memref<127x256xbf16, #tpu.memory_space<vmem>>, %arg3: memref<1x256xf32, #tpu.memory_space<vmem>>, %arg4: memref<256x256xbf16, #tpu.memory_space<vmem>>, %arg5: memref<1x256xf32, #tpu.memory_space<vmem>>, %arg6: memref<256x128xbf16, #tpu.memory_space<vmem>>, %arg7: memref<1x128xf32, #tpu.memory_space<vmem>>, %arg8: memref<8x128xf32, #tpu.memory_space<vmem>>) attributes {dimension_semantics = [#tpu.dimension_semantics<parallel>], iteration_bounds = array<i64: 1>, scalar_prefetch = 0 : i64, scratch_operands = 0 : i64, tpu.core_type = #tpu.core_type<tc>, window_params = [{transform_indices = @transform_0, window_bounds = array<i64: 8, 127>}, {pipeline_mode = #tpu.pipeline_mode<synchronous>, transform_indices = @transform_1, window_bounds = array<i64: 127, 256>}, {pipeline_mode = #tpu.pipeline_mode<synchronous>, transform_indices = @transform_2, window_bounds = array<i64: 1, 256>}, {pipeline_mode = #tpu.pipeline_mode<synchronous>, transform_indices = @transform_3, window_bounds = array<i64: 256, 256>}, {pipeline_mode = #tpu.pipeline_mode<synchronous>, transform_indices = @transform_4, window_bounds = array<i64: 1, 256>}, {pipeline_mode = #tpu.pipeline_mode<synchronous>, transform_indices = @transform_5, window_bounds = array<i64: 256, 128>}, {pipeline_mode = #tpu.pipeline_mode<synchronous>, transform_indices = @transform_6, window_bounds = array<i64: 1, 128>}, {transform_indices = @transform_7, window_bounds = array<i64: 8, 128>}]} {
    %c0 = arith.constant 0 : index
    %c0_0 = arith.constant 0 : index
    %0 = vector.load %arg1[%c0, %c0_0] : memref<8x127xf32, #tpu.memory_space<vmem>>, vector<8x127xf32>
    %1 = arith.truncf %0 : vector<8x127xf32> to vector<8x127xbf16>
    %c0_1 = arith.constant 0 : index
    %c0_2 = arith.constant 0 : index
    %2 = vector.load %arg2[%c0_1, %c0_2] : memref<127x256xbf16, #tpu.memory_space<vmem>>, vector<127x256xbf16>
    %cst = arith.constant dense<0.000000e+00> : vector<8x256xf32>
    %3 = tpu.matmul %1, %2, %cst {dimension_numbers = #tpu.dot_dimension_numbers<[1], [0], [0], [1], [0, 0, 1, 1], [], []>} : vector<8x127xbf16>, vector<127x256xbf16>, vector<8x256xf32> -> vector<8x256xf32>
    %c0_3 = arith.constant 0 : index
    %c0_4 = arith.constant 0 : index
    %4 = vector.load %arg3[%c0_3, %c0_4] : memref<1x256xf32, #tpu.memory_space<vmem>>, vector<1x256xf32>
    %5 = vector.broadcast %4 : vector<1x256xf32> to vector<8x256xf32>
    %6 = arith.addf %3, %5 : vector<8x256xf32>
    %7 = math.tanh %6 : vector<8x256xf32>
    %8 = arith.truncf %7 : vector<8x256xf32> to vector<8x256xbf16>
    %c0_5 = arith.constant 0 : index
    %c0_6 = arith.constant 0 : index
    %9 = vector.load %arg4[%c0_5, %c0_6] : memref<256x256xbf16, #tpu.memory_space<vmem>>, vector<256x256xbf16>
    %cst_7 = arith.constant dense<0.000000e+00> : vector<8x256xf32>
    %10 = tpu.matmul %8, %9, %cst_7 {dimension_numbers = #tpu.dot_dimension_numbers<[1], [0], [0], [1], [0, 0, 1, 1], [], []>} : vector<8x256xbf16>, vector<256x256xbf16>, vector<8x256xf32> -> vector<8x256xf32>
    %c0_8 = arith.constant 0 : index
    %c0_9 = arith.constant 0 : index
    %11 = vector.load %arg5[%c0_8, %c0_9] : memref<1x256xf32, #tpu.memory_space<vmem>>, vector<1x256xf32>
    %12 = vector.broadcast %11 : vector<1x256xf32> to vector<8x256xf32>
    %13 = arith.addf %10, %12 : vector<8x256xf32>
    %14 = math.tanh %13 : vector<8x256xf32>
    %15 = arith.truncf %14 : vector<8x256xf32> to vector<8x256xbf16>
    %c0_10 = arith.constant 0 : index
    %c0_11 = arith.constant 0 : index
    %16 = vector.load %arg6[%c0_10, %c0_11] : memref<256x128xbf16, #tpu.memory_space<vmem>>, vector<256x128xbf16>
    %cst_12 = arith.constant dense<0.000000e+00> : vector<8x128xf32>
    %17 = tpu.matmul %15, %16, %cst_12 {dimension_numbers = #tpu.dot_dimension_numbers<[1], [0], [0], [1], [0, 0, 1, 1], [], []>} : vector<8x256xbf16>, vector<256x128xbf16>, vector<8x128xf32> -> vector<8x128xf32>
    %c0_13 = arith.constant 0 : index
    %c0_14 = arith.constant 0 : index
    %18 = vector.load %arg7[%c0_13, %c0_14] : memref<1x128xf32, #tpu.memory_space<vmem>>, vector<1x128xf32>
    %19 = vector.broadcast %18 : vector<1x128xf32> to vector<8x128xf32>
    %20 = arith.addf %17, %19 : vector<8x128xf32>
    %c0_15 = arith.constant 0 : index
    %c0_16 = arith.constant 0 : index
    %21 = vector.load %arg8[%c0_15, %c0_16] : memref<8x128xf32, #tpu.memory_space<vmem>>, vector<8x128xf32>
    tpu.vector_store %arg8[%c0_15, %c0_16], %20 {strides = array<i32>} : memref<8x128xf32, #tpu.memory_space<vmem>>, vector<8x128xf32>,
    return
  }
  func.func @transform_0(%arg0: i32) -> (i32, i32) {
    %c0_i32 = arith.constant 0 : i32
    %c0_i32_0 = arith.constant 0 : i32
    return %arg0, %c0_i32 : i32, i32
  }
  func.func @transform_1(%arg0: i32) -> (i32, i32) {
    %c0_i32 = arith.constant 0 : i32
    %c0_i32_0 = arith.constant 0 : i32
    %c0_i32_1 = arith.constant 0 : i32
    return %c0_i32, %c0_i32_0 : i32, i32
  }
  func.func @transform_2(%arg0: i32) -> (i32, i32) {
    %c0_i32 = arith.constant 0 : i32
    %c0_i32_0 = arith.constant 0 : i32
    %c0_i32_1 = arith.constant 0 : i32
    return %c0_i32, %c0_i32_0 : i32, i32
  }
  func.func @transform_3(%arg0: i32) -> (i32, i32) {
    %c0_i32 = arith.constant 0 : i32
    %c0_i32_0 = arith.constant 0 : i32
    %c0_i32_1 = arith.constant 0 : i32
    return %c0_i32, %c0_i32_0 : i32, i32
  }
  func.func @transform_4(%arg0: i32) -> (i32, i32) {
    %c0_i32 = arith.constant 0 : i32
    %c0_i32_0 = arith.constant 0 : i32
    %c0_i32_1 = arith.constant 0 : i32
    return %c0_i32, %c0_i32_0 : i32, i32
  }
  func.func @transform_5(%arg0: i32) -> (i32, i32) {
    %c0_i32 = arith.constant 0 : i32
    %c0_i32_0 = arith.constant 0 : i32
    %c0_i32_1 = arith.constant 0 : i32
    return %c0_i32, %c0_i32_0 : i32, i32
  }
  func.func @transform_6(%arg0: i32) -> (i32, i32) {
    %c0_i32 = arith.constant 0 : i32
    %c0_i32_0 = arith.constant 0 : i32
    %c0_i32_1 = arith.constant 0 : i32
    return %c0_i32, %c0_i32_0 : i32, i32
  }
  func.func @transform_7(%arg0: i32) -> (i32, i32) {
    %c0_i32 = arith.constant 0 : i32
    %c0_i32_0 = arith.constant 0 : i32
    return %arg0, %c0_i32 : i32, i32
  }
}

</mosaic_0001>

<bundles_post_ra>
// kernel: augmented_ode_func_forward.1
= control target key start
LH: loop header
LB: loop body
LE: loop exit
PB: predicated region body
PF: predicated region fallthrough
CT: control target
= control target key end

     0   :  { %12 = vsyncpa [#allocation3], 0  ;;  %s1082_s0 = inlined_call_operand.vmem [shape: f32[8,127], index: 0, kind: input, shape index: {}]   ;;  %s1083_s1 = inlined_call_operand.hbm [shape: bf16[127,256], index: 1, kind: input, shape index: {}]   ;;  %s1084_s2 = inlined_call_operand.vmem [shape: f32[1,256], index: 2, kind: input, shape index: {}]   ;;  %s1085_s3 = inlined_call_operand.hbm [shape: bf16[256,256], index: 3, kind: input, shape index: {}]   ;;  %s1086_s4 = inlined_call_operand.vmem [shape: f32[1,256], index: 4, kind: input, shape index: {}]   ;;  %s1087_s5 = inlined_call_operand.hbm [shape: bf16[256,128], index: 5, kind: input, shape index: {}]   ;;  %s1088_s6 = inlined_call_operand.vmem [shape: f32[1,128], index: 6, kind: input, shape index: {}]   ;;  %s1089_s7 = inlined_call_operand.hbm [shape: f32[8,128], index: 7, kind: output, shape index: {}]  }
   0x1   :  { %13 = vsyncpa [#allocation6], 0 }
   0x2   :  { %14 = vsyncpa [#allocation4], 0  ;;  %s965_s24 = smov [#allocation5]   ;;  %s966_s26 = smov [#allocation2]  }
   0x3   :  { %s36_s25 = sshll.u32 %s965_s24, 4  ;;  %s22_s27 = sshll.u32 %s966_s26, 4  ;;  %s37_s25 = int_to_ptr.vmem [resolvable:$true] %s36_s25  ;;  %s1015_s27 = int_to_ptr.vmem [resolvable:$true] %s22_s27 }
   0x4   :  { %s871_s30 = scalar_lea.hbm %s1085_s3, 4096 }
   0x5   :  { %p872_p0 = scmp.ne.s32.totalorder %s1085_s3, %s871_s30  ;;  %p875_p1 = scmp.lt.u32.totalorder %s871_s30, %s1085_s3 }
   0x7   :  { %p877_p2 = pnand %p875_p1, %p872_p0 }
   0x9   :  { %880 = shalt.err (!%p877_p2)
}
   0xa   :  { %s881_s12 = scalar_lea.vmem %s37_s25, 4096  ;;  %p886_p4 = scmp.lt.s32.totalorder %s37_s25, %s37_s25 }
   0xb   :  { %p882_p3 = scmp.ne.s32.totalorder %s37_s25, %s881_s12  ;;  %p887_p5 = scmp.lt.s32.totalorder %s881_s12, %s881_s12 }
   0xd   :  { %p888_p6 = por %p887_p5, %p886_p4 }
   0xf   :  { %p889_p7 = pnand %p888_p6, %p882_p3 }
  0x11   :  { %892 = shalt.err (!%p889_p7)
}
  0x12   :  { %s967_s13 = smov 128   ;;  %s968_s14 = smov 8  }
  0x13   :  { %42 = dma.hbm_to_vmem [thread:$0]  %s1085_s3, 4096, %s37_s25, [#allocation6], %s967_s13, %s967_s13, %s968_s14  }
  0x14   :  { %s893_s19 = scalar_lea.hbm %s1083_s1, 2048 }
  0x15   :  { %p894_p8 = scmp.ne.s32.totalorder %s1083_s1, %s893_s19  ;;  %p897_p9 = scmp.lt.u32.totalorder %s893_s19, %s1083_s1 }
  0x17   :  { %p899_p10 = pnand %p897_p9, %p894_p8 }
  0x19   :  { %902 = shalt.err (!%p899_p10)
}
  0x1a   :  { %s903_s24 = scalar_lea.vmem %s1015_s27, 2048  ;;  %p908_p12 = scmp.lt.s32.totalorder %s1015_s27, %s1015_s27 }
  0x1b   :  { %p904_p11 = scmp.ne.s32.totalorder %s1015_s27, %s903_s24  ;;  %p909_p13 = scmp.lt.s32.totalorder %s903_s24, %s903_s24 }
  0x1d   :  { %p910_p0 = por %p909_p13, %p908_p12 }
  0x1f   :  { %p911_p1 = pnand %p910_p0, %p904_p11 }
  0x21   :  { %914 = shalt.err (!%p911_p1)
}
  0x22   :  { %28 = dma.hbm_to_vmem [thread:$0]  %s1083_s1, 2048, %s1015_s27, [#allocation3], %s967_s13, %s967_s13, %s968_s14  }
  0x23   :  { %s969_s26 = smov [#allocation7]   ;;  %s915_s8 = scalar_lea.hbm %s1087_s5, 2048 }
  0x24   :  { %s50_s28 = sshll.u32 %s969_s26, 4  ;;  %p916_p2 = scmp.ne.s32.totalorder %s1087_s5, %s915_s8  ;;  %s51_s28 = int_to_ptr.vmem [resolvable:$true] %s50_s28 }
  0x25   :  { %p919_p3 = scmp.lt.u32.totalorder %s915_s8, %s1087_s5 }
  0x27   :  { %p921_p4 = pnand %p919_p3, %p916_p2 }
  0x29   :  { %924 = shalt.err (!%p921_p4)
}
  0x2a   :  { %s925_s15 = scalar_lea.vmem %s51_s28, 2048  ;;  %p930_p6 = scmp.lt.s32.totalorder %s51_s28, %s51_s28 }
  0x2b   :  { %p926_p5 = scmp.ne.s32.totalorder %s51_s28, %s925_s15  ;;  %p931_p7 = scmp.lt.s32.totalorder %s925_s15, %s925_s15 }
  0x2d   :  { %p932_p8 = por %p931_p7, %p930_p6 }
  0x2f   :  { %p933_p9 = pnand %p932_p8, %p926_p5 }
  0x31   :  { %936 = shalt.err (!%p933_p9)
}
  0x32   :  { %s970_s1 = smov 64   ;;  %s971_s27 = smov 4  }
  0x33   :  { %56 = dma.hbm_to_vmem [thread:$0]  %s1087_s5, 2048, %s51_s28, [#allocation6], %s970_s1, %s970_s1, %s971_s27  }
  0x34   :  { %959 = dma.done.wait [#allocation3], 2048  }
  0x35   :  { %960 = vsyncadd [#allocation3], 4294965248 }
  0x36   :  { %961 = dma.done.wait [#allocation6], 6144  }
  0x37   :  { %962 = vsyncadd [#allocation6], 4294961152  ;;  %v972_v0 = vmov 0   ;;  %v775_v1 = vld [vmem:[#allocation2 + $0x4] ss:$8 sps:$4 sm:$0xff]   ;;  %vm181_vm0 = vcmask 1046528  }
  0x38   :  { %223 = vmatprep.mubr.bf16.mxu0 %v972_v0  ;;  %v777_v2 = vld [vmem:[#allocation2] ss:$8 sps:$4 sm:$0xff]   ;;  %191 = vmatprep.subr.bf16.mxu0 %v775_v1  ;;  %v778_v3 = vld [vmem:[#allocation2 + $0x14] ss:$8 sps:$4 sm:$0xff]   ;;  %v780_v4 = vld [vmem:[#allocation2 + $0x10] ss:$8 sps:$4 sm:$0xff]   ;;  %v89_v0 = vlaneseq }
  0x39   :  { %192 = vmatpush1.bf16.msra.mxu0 %v777_v2  ;;  %v781_v5 = vld [vmem:[#allocation2 + $0x24] ss:$8 sps:$4 sm:$0xff]   ;;  %v783_v6 = vld [vmem:[#allocation2 + $0x20] ss:$8 sps:$4 sm:$0xff]   ;;  %v784_v7 = vld [vmem:[#allocation2 + $0x34] ss:$8 sps:$4 sm:$0xff]  }
  0x3a   :  { %193 = vmatprep.subr.bf16.mxu0 %v778_v3  ;;  %v786_v8 = vld [vmem:[#allocation2 + $0x30] ss:$8 sps:$4 sm:$0xff]   ;;  %v787_v9 = vld [vmem:[#allocation2 + $0x44] ss:$8 sps:$4 sm:$0xff]   ;;  %v801_v11 = vld [vmem:[#allocation5] ss:$8 sps:$4 sm:$0xff]  }
  0x3b   :  { %v799_v10 = vld [vmem:[#allocation5 + $0x4] ss:$8 sps:$4 sm:$0xff]   ;;  %v802_v12 = vld [vmem:[#allocation5 + $0x14] ss:$8 sps:$4 sm:$0xff]   ;;  %v789_v13 = vld [vmem:[#allocation2 + $0x40] ss:$8 sps:$4 sm:$0xff]  }
  0x3c   :  { %440 = vmatprep.subr.bf16.mxu1 %v799_v10  ;;  %v804_v14 = vld [vmem:[#allocation5 + $0x10] ss:$8 sps:$4 sm:$0xff]   ;;  %v805_v15 = vld [vmem:[#allocation5 + $0x24] ss:$8 sps:$4 sm:$0xff]   ;;  %v790_v16 = vld [vmem:[#allocation2 + $0x54] ss:$8 sps:$4 sm:$0xff]  }
  0x3d   :  { %194 = vmatpush1.bf16.msra.mxu0 %v780_v4  ;;  %441 = vmatpush1.bf16.msra.mxu1 %v801_v11  ;;  %v792_v17 = vld [vmem:[#allocation2 + $0x50] ss:$8 sps:$4 sm:$0xff]   ;;  %vm182_vm1 = vcmask 1047552   ;;  %v793_v18 = vld [vmem:[#allocation2 + $0x64] ss:$8 sps:$4 sm:$0xff]   ;;  %v973_v19 = vmov 65535  }
  0x3e   :  { %195 = vmatprep.subr.bf16.mxu0 %v781_v5  ;;  %442 = vmatprep.subr.bf16.mxu1 %v802_v12  ;;  %v183_v20 = vsel %vm181_vm0, 4294967295, %v973_v19  ;;  %v807_v21 = vld [vmem:[#allocation5 + $0x20] ss:$8 sps:$4 sm:$0xff]   ;;  %v808_v22 = vld [vmem:[#allocation5 + $0x34] ss:$8 sps:$4 sm:$0xff]   ;;  %vm177_vm2 = vcmask 1039360  }
  0x3f   :  { %v796_v23 = vld [vmem:[#allocation2 + $0x74] ss:$8 sps:$4 sm:$0xff]   ;;  %v795_v24 = vld [vmem:[#allocation2 + $0x60] ss:$8 sps:$4 sm:$0xff]   ;;  %v184_v25 = vsel %vm182_vm1, %v183_v20, 0  ;;  %v90_v1 = vshrl.u32 %v89_v0, 7 }
  0x40   :  { %v798_v26 = vld [vmem:[#allocation2 + $0x70] ss:$8 sps:$4 sm:$0xff]   ;;  %v811_v28 = vld [vmem:[#allocation5 + $0x44] ss:$8 sps:$4 sm:$0xff]   ;;  %v189_v29 = vand.u32 %v796_v23, %v184_v25  ;;  %v813_v31 = vld [vmem:[#allocation5 + $0x40] ss:$8 sps:$4 sm:$0xff]  }
  0x41   :  { %196 = vmatpush1.bf16.msra.mxu0 %v783_v6  ;;  %443 = vmatpush1.bf16.msra.mxu1 %v804_v14  ;;  %v810_v27 = vld [vmem:[#allocation5 + $0x30] ss:$8 sps:$4 sm:$0xff]   ;;  %v69_v30 = vld [vmem:[%s1082_s0] sm:$0xff]  ;;  %v186_v32 = vand.u32 %v798_v26, %v184_v25  ;;  %v814_v33 = vld [vmem:[#allocation5 + $0x54] ss:$8 sps:$4 sm:$0xff]   ;;  %v91_v2 = vsub.s32 0, %v90_v1 }
  0x42   :  { %197 = vmatprep.subr.bf16.mxu0 %v784_v7  ;;  %444 = vmatprep.subr.bf16.mxu1 %v805_v15  ;;  %v816_v34 = vld [vmem:[#allocation5 + $0x50] ss:$8 sps:$4 sm:$0xff]   ;;  %v817_v35 = vld [vmem:[#allocation5 + $0x64] ss:$8 sps:$4 sm:$0xff]   ;;  %v70_v36 = vpack.c.bf16 %v69_v30, %v69_v30  ;;  %v819_v37 = vld [vmem:[#allocation5 + $0x60] ss:$8 sps:$4 sm:$0xff]  }
  0x43   :  { %v820_v38 = vld [vmem:[#allocation5 + $0x74] ss:$8 sps:$4 sm:$0xff]   ;;  %v822_v39 = vld [vmem:[#allocation5 + $0x70] ss:$8 sps:$4 sm:$0xff]   ;;  %v823_v40 = vld [vmem:[#allocation5 + $0x84] ss:$8 sps:$4 sm:$0xff]  }
  0x44   :  { %v825_v41 = vld [vmem:[#allocation5 + $0x80] ss:$8 sps:$4 sm:$0xff]   ;;  %v826_v42 = vld [vmem:[#allocation5 + $0x94] ss:$8 sps:$4 sm:$0xff]   ;;  %v828_v43 = vld [vmem:[#allocation5 + $0x90] ss:$8 sps:$4 sm:$0xff]  }
  0x45   :  { %198 = vmatpush1.bf16.msra.mxu0 %v786_v8  ;;  %445 = vmatpush1.bf16.msra.mxu1 %v807_v21  ;;  %v829_v44 = vld [vmem:[#allocation5 + $0xa4] ss:$8 sps:$4 sm:$0xff]   ;;  %v831_v45 = vld [vmem:[#allocation5 + $0xa0] ss:$8 sps:$4 sm:$0xff]   ;;  %v832_v46 = vld [vmem:[#allocation5 + $0xb4] ss:$8 sps:$4 sm:$0xff]  }
  0x46   :  { %199 = vmatprep.subr.bf16.mxu0 %v787_v9  ;;  %446 = vmatprep.subr.bf16.mxu1 %v808_v22  ;;  %v834_v47 = vld [vmem:[#allocation5 + $0xb0] ss:$8 sps:$4 sm:$0xff]   ;;  %v835_v48 = vld [vmem:[#allocation5 + $0xc4] ss:$8 sps:$4 sm:$0xff]   ;;  %v837_v49 = vld [vmem:[#allocation5 + $0xc0] ss:$8 sps:$4 sm:$0xff]  }
  0x47   :  { %v838_v50 = vld [vmem:[#allocation5 + $0xd4] ss:$8 sps:$4 sm:$0xff]   ;;  %v840_v51 = vld [vmem:[#allocation5 + $0xd0] ss:$8 sps:$4 sm:$0xff]   ;;  %v841_v52 = vld [vmem:[#allocation5 + $0xe4] ss:$8 sps:$4 sm:$0xff]  }
  0x48   :  { %v843_v53 = vld [vmem:[#allocation5 + $0xe0] ss:$8 sps:$4 sm:$0xff]   ;;  %v844_v54 = vld [vmem:[#allocation5 + $0xf4] ss:$8 sps:$4 sm:$0xff]   ;;  %v846_v55 = vld [vmem:[#allocation5 + $0xf0] ss:$8 sps:$4 sm:$0xff]  }
  0x49   :  { %200 = vmatpush1.bf16.msra.mxu0 %v789_v13  ;;  %447 = vmatpush1.bf16.msra.mxu1 %v810_v27  ;;  %v847_v56 = vld [vmem:[#allocation7 + $0x40] sm:$0xff]   ;;  %v849_v58 = vld [vmem:[#allocation7 + $0x48] sm:$0xff]   ;;  %v851_v60 = vld [vmem:[#allocation7 + $0x50] sm:$0xff]   ;;  %v95_v4 = vsub.s32 1, %v90_v1 }
  0x4a   :  { %201 = vmatprep.subr.bf16.mxu0 %v790_v16  ;;  %448 = vmatprep.subr.bf16.mxu1 %v811_v28  ;;  %v848_v57 = vld [vmem:[#allocation7] sm:$0xff]   ;;  %v850_v59 = vld [vmem:[#allocation7 + $0x8] sm:$0xff]   ;;  %v852_v61 = vld [vmem:[#allocation7 + $0x10] sm:$0xff]  }
  0x4b   :  { %v853_v62 = vld [vmem:[#allocation7 + $0x58] sm:$0xff]   ;;  %v87_v3 = vld [vmem:[%s1084_s2] sm:$0x3]  ;;  %v857_v19 = vld [vmem:[#allocation7 + $0x68] sm:$0xff]  }
  0x4c   :  { %v854_v63 = vld [vmem:[#allocation7 + $0x18] sm:$0xff]   ;;  %v92_v5 = vrot.slane %v87_v3, %v91_v2  ;;  %v96_v6 = vrot.slane %v87_v3, %v95_v4  ;;  %v858_v20 = vld [vmem:[#allocation7 + $0x28] sm:$0xff]   ;;  %v859_v21 = vld [vmem:[#allocation7 + $0x70] sm:$0xff]  }
  0x4d   :  { %202 = vmatpush1.bf16.msra.mxu0 %v792_v17  ;;  %449 = vmatpush1.bf16.msra.mxu1 %v813_v31  ;;  %v855_v17 = vld [vmem:[#allocation7 + $0x60] sm:$0xff]   ;;  %v860_v22 = vld [vmem:[#allocation7 + $0x30] sm:$0xff]   ;;  %v861_v23 = vld [vmem:[#allocation7 + $0x78] sm:$0xff]  }
  0x4e   :  { %203 = vmatprep.subr.bf16.mxu0 %v793_v18  ;;  %450 = vmatprep.subr.bf16.mxu1 %v814_v33  ;;  %v856_v18 = vld [vmem:[#allocation7 + $0x20] sm:$0xff]  }
  0x4f   :  { %v268_v25 = vld [vmem:[%s1086_s4] sm:$0x3]  ;;  %s974_s4 = smov [#allocation8]  }
  0x50   :  { %v273_v26 = vrot.slane %v268_v25, %v91_v2  ;;  %v277_v27 = vrot.slane %v268_v25, %v95_v4  ;;  %s667_s21 = sshll.u32 %s974_s4, 4  ;;  %s668_s21 = int_to_ptr.vmem [resolvable:$true] %s667_s21 }
  0x51   :  { %204 = vmatpush1.bf16.msra.mxu0 %v795_v24  ;;  %451 = vmatpush1.bf16.msra.mxu1 %v816_v34  ;;  %v862_v24 = vld [vmem:[#allocation7 + $0x38] sm:$0xff]   ;;  %s937_s22 = scalar_lea.vmem %s668_s21, 128  ;;  %p942_p11 = scmp.lt.s32.totalorder %s668_s21, %s668_s21 }
  0x52   :  { %205 = vmatprep.subr.bf16.mxu0 %v189_v29  ;;  %452 = vmatprep.subr.bf16.mxu1 %v817_v35  ;;  %p938_p10 = scmp.ne.s32.totalorder %s668_s21, %s937_s22  ;;  %p943_p12 = scmp.lt.s32.totalorder %s937_s22, %s937_s22 }
  0x54   :  { %p944_p13 = por %p943_p12, %p942_p11 }
  0x55   :  { %206 = vmatpush1.bf16.msra.mxu0 %v186_v32  ;;  %453 = vmatpush1.bf16.msra.mxu1 %v819_v37 }
  0x56   :  { %454 = vmatprep.subr.bf16.mxu1 %v820_v38  ;;  %743 = vmatprep.subr.bf16.mxu0 %v847_v56  ;;  %p945_p0 = pnand %p944_p13, %p938_p10 }
  0x58   :  { %693 = vmatmul.mubr.msk.bf16.vlgmr.msra.gmra.mrb[0].mxu0 %vm177_vm2, %v70_v36 }
  0x59   :  { %455 = vmatpush1.bf16.msra.mxu1 %v822_v39  ;;  %744 = vmatpush3.bf16.msra.mxu0 %v848_v57  ;;  %v726_v39 = vld [vmem:[%s1088_s6] ss:$0 sm:$0xff] }
  0x5a   :  { %456 = vmatprep.subr.bf16.mxu1 %v823_v40  ;;  %745 = vmatprep.subr.bf16.mxu0 %v849_v58 }
  0x5d   :  { %457 = vmatpush1.bf16.msra.mxu1 %v825_v41  ;;  %746 = vmatpush3.bf16.msra.mxu0 %v850_v59 }
  0x5e   :  { %458 = vmatprep.subr.bf16.mxu1 %v826_v42  ;;  %747 = vmatprep.subr.bf16.mxu0 %v851_v60 }
  0x61   :  { %459 = vmatpush1.bf16.msra.mxu1 %v828_v43  ;;  %748 = vmatpush3.bf16.msra.mxu0 %v852_v61 }
  0x62   :  { %460 = vmatprep.subr.bf16.mxu1 %v829_v44  ;;  %749 = vmatprep.subr.bf16.mxu0 %v853_v62 }
  0x65   :  { %461 = vmatpush1.bf16.msra.mxu1 %v831_v45  ;;  %750 = vmatpush3.bf16.msra.mxu0 %v854_v63 }
  0x66   :  { %462 = vmatprep.subr.bf16.mxu1 %v832_v46  ;;  %751 = vmatprep.subr.bf16.mxu0 %v855_v17 }
  0x69   :  { %463 = vmatpush1.bf16.msra.mxu1 %v834_v47  ;;  %752 = vmatpush3.bf16.msra.mxu0 %v856_v18 }
  0x6a   :  { %464 = vmatprep.subr.bf16.mxu1 %v835_v48  ;;  %753 = vmatprep.subr.bf16.mxu0 %v857_v19 }
  0x6d   :  { %465 = vmatpush1.bf16.msra.mxu1 %v837_v49  ;;  %754 = vmatpush3.bf16.msra.mxu0 %v858_v20 }
  0x6e   :  { %466 = vmatprep.subr.bf16.mxu1 %v838_v50  ;;  %755 = vmatprep.subr.bf16.mxu0 %v859_v21 }
  0x71   :  { %467 = vmatpush1.bf16.msra.mxu1 %v840_v51  ;;  %756 = vmatpush3.bf16.msra.mxu0 %v860_v22 }
  0x72   :  { %468 = vmatprep.subr.bf16.mxu1 %v841_v52  ;;  %757 = vmatprep.subr.bf16.mxu0 %v861_v23 }
  0x75   :  { %469 = vmatpush1.bf16.msra.mxu1 %v843_v53  ;;  %758 = vmatpush3.bf16.msra.mxu0 %v862_v24 }
  0x76   :  { %470 = vmatprep.subr.bf16.mxu1 %v844_v54 }
  0x79   :  { %471 = vmatpush1.bf16.msra.mxu1 %v846_v55 }
 0x12b   :  { %v225_v7 = vpop.f32.mrb[0].mxu0 }
 0x12c   :  { %v226_v8 = vadd.f32 %v225_v7, %v92_v5  ;;  %v227_v9 = vpop.f32.mrb[1].mxu0 }
 0x12d   :  { %v228_v10 = vadd.f32 %v227_v9, %v96_v6  ;;  %v229_v11 = vpop.f32.mrb[2].mxu0 }
 0x12e   :  { %863 = vtanh.f32 %v226_v8  ;;  %v230_v12 = vpop.f32.mrb[3].mxu0 }
 0x12f   :  { %865 = vtanh.f32 %v228_v10 }
 0x138   :  { %v864_v13 = vpop.eup %863 }
 0x139   :  { %v866_v14 = vpop.eup %865  ;;  %v234_v16 = vpack.c.bf16 %v864_v13, %v864_v13 }
 0x13a   :  { %v235_v15 = vpack.c.bf16 %v866_v14, %v866_v14 }
 0x13c   :  { %472 = vmatprep.mubr.bf16.mxu1 %v235_v15 }
 0x13d   :  { %473 = vmatmul.mubr.bf16.vlgmr.msra.gmra.mrb[0].mxu1 %v234_v16 }
 0x210   :  { %v474_v28 = vpop.f32.mrb[0].mxu1 }
 0x211   :  { %v475_v29 = vadd.f32 %v474_v28, %v273_v26  ;;  %v476_v30 = vpop.f32.mrb[1].mxu1 }
 0x212   :  { %v477_v31 = vadd.f32 %v476_v30, %v277_v27  ;;  %v478_v32 = vpop.f32.mrb[2].mxu1 }
 0x213   :  { %867 = vtanh.f32 %v475_v29  ;;  %v479_v33 = vpop.f32.mrb[3].mxu1 }
 0x214   :  { %869 = vtanh.f32 %v477_v31 }
 0x21d   :  { %v868_v34 = vpop.eup %867 }
 0x21e   :  { %v870_v35 = vpop.eup %869  ;;  %v483_v37 = vpack.c.bf16 %v868_v34, %v868_v34 }
 0x21f   :  { %v484_v36 = vpack.c.bf16 %v870_v35, %v870_v35 }
 0x221   :  { %652 = vmatprep.mubr.bf16.mxu0 %v484_v36 }
 0x222   :  { %653 = vmatmul.mubr.bf16.vlgmr.msra.gmra.mrb[4].mxu0 %v483_v37 }
 0x2f5   :  { %v759_v38 = vpop.f32.mrb[4].mxu0 }
 0x2f6   :  { %v760_v40 = vpop.f32.mrb[5].mxu0 }
 0x2f7   :  { %v761_v41 = vadd.f32 %v760_v40, %v759_v38  ;;  %v762_v42 = vpop.f32.mrb[6].mxu0 }
 0x2f8   :  { %v763_v43 = vpop.f32.mrb[7].mxu0 }
 0x2f9   :  { %v655_v44 = vadd.f32 %v761_v41, %v726_v39 }
 0x2fb   :  { %660 = vst [vmem:[#allocation8] sm:$0xff] %v655_v44 }
 0x2fc   :  { %948 = shalt.err (!%p945_p0)
}
 0x2fd   :  { %s949_s6 = scalar_lea.hbm %s1089_s7, 128 }
 0x2fe   :  { %p950_p1 = scmp.ne.s32.totalorder %s1089_s7, %s949_s6  ;;  %p953_p2 = scmp.lt.u32.totalorder %s949_s6, %s1089_s7 }
 0x300   :  { %p955_p3 = pnand %p953_p2, %p950_p1 }
 0x302   :  { %958 = shalt.err (!%p955_p3)
}
 0x303   :  { %670 = dma.vmem_to_hbm [thread:$0]  %s668_s21, 128, %s1089_s7, [#allocation4]  }
 0x304   :  { %963 = dma.done.wait [#allocation4], 128  }
 0x305   :  { %964 = vsyncadd [#allocation4], 4294967168 }
 0x306   :  { %674 = vsyncpa [#allocation3], 1 }
 0x307   :  { %675 = vsyncpa [#allocation6], 1 }
 0x308   :  { %676 = vsyncpa [#allocation4], 1 }

</bundles_post_ra>
